<compile_context>
chip_gen: v7x
topology: tpu7x:2x2x1
jax: 0.10.0
libtpu: 0.0.40
codegen_flags: <defaults>
</compile_context>

<pallas_src>
import jax
import jax.numpy as jnp
from jax.experimental import pallas as pl
from jax.experimental.pallas import tpu as pltpu


# -----------------------------------------------------------------------------
# Lane-dense kernel (fast path, in_features == out_features == 2).
#
# x_ref: (tile_r, L) slab of the row-major-flattened activations.
# p_ref: (4, L) lane patterns:
#   row 0: weight applied to the lane's own value   [W00, W11, W00, W11, ...]
#   row 1: weight applied to the right neighbor x[i+1]  [W01, 0, W01, 0, ...]
#   row 2: weight applied to the left  neighbor x[i-1]  [0, W10, 0, W10, ...]
#   row 3: bias pattern                               [b0,  b1,  b0,  b1, ...]
# Even lane i holds x_b0 (partner at i+1); odd lane holds x_b1 (partner at i-1).
# Since L is even, feature pairs never straddle a row, so the lane-roll wraparound
# at lanes 0 / L-1 is multiplied by a zero weight pattern entry or lands on the
# correct partner.
# -----------------------------------------------------------------------------
def _dense_kernel(x_ref, p_ref, o_ref):
    x = x_ref[...]                                    # (tile_r, L)
    p = p_ref[...]                                    # (4, L)
    lanes = x.shape[-1]
    # jnp.roll convention: roll(x, s)[i] = x[i - s]  (non-negative static shifts)
    left = pltpu.roll(x, shift=1, axis=1)             # left[i]  = x[i-1]
    right = pltpu.roll(x, shift=lanes - 1, axis=1)    # right[i] = x[i+1]
    y = x * p[0:1, :] + right * p[1:2, :] + left * p[2:3, :] + p[3:4, :]
    o_ref[...] = y.astype(o_ref.dtype)


# -----------------------------------------------------------------------------
# Generic (lane-sparse) fallback kernel: y = x @ W.T + b via broadcast VPU FMAs.
# p_ref rows 0..in-1 = W^T, last row = bias.
# -----------------------------------------------------------------------------
def _generic_kernel(x_ref, p_ref, o_ref):
    x = x_ref[...]
    p = p_ref[...]
    in_features = p.shape[0] - 1
    acc = x[:, 0:1] * p[0:1, :]
    for i in range(1, in_features):                   # tiny static unroll
        acc = acc + x[:, i:i + 1] * p[i:i + 1, :]
    acc = acc + p[in_features:in_features + 1, :]     # bias row
    o_ref[...] = acc.astype(o_ref.dtype)


def _pick_lane_width(total_elems, max_lanes=4096):
    """Largest multiple-of-128 lane width that divides total_elems (prefer >=8 rows)."""
    for lanes in (1024, 2048, 4096, 512, 256, 128):
        if lanes <= max_lanes and total_elems % lanes == 0 and total_elems // lanes >= 8:
            return lanes
    for lanes in (4096, 2048, 1024, 512, 256, 128):
        if lanes <= max_lanes and total_elems % lanes == 0 and total_elems // lanes >= 1:
            return lanes
    return None


def _pick_row_tile(rows, lanes, itemsize, target_block_bytes):
    """Row tile sized to ~target_block_bytes (v7x-safe), multiple of 8 when tiled."""
    max_rows = max(8, (target_block_bytes // (lanes * itemsize)) // 8 * 8)
    if rows <= max_rows:
        # Give v7x's two TensorCores >= 2 parallel grid steps when we can keep
        # sublane-aligned tiles; no effect on single-TC v5e/v6e.
        if rows >= 16 and rows % 16 == 0 and rows // 2 >= 8:
            return rows // 2
        return rows
    return max_rows


def embedding_net_forward(x, weight, bias, *, target_block_bytes=4 << 20):
    """y = x @ weight.T + bias   (exact torch.nn.Linear semantics).

    weight: (out_features, in_features)  -- PyTorch layout
    bias:   (out_features,)
    """
    B, in_features = x.shape
    out_features = weight.shape[0]
    itemsize = jnp.dtype(x.dtype).itemsize
    total = B * in_features

    lanes = None
    if in_features == 2 and out_features == 2:
        lanes = _pick_lane_width(total)

    if lanes is not None:
        # ---------------- lane-dense fast path ----------------
        rows = total // lanes
        tile_r = _pick_row_tile(rows, lanes, itemsize, target_block_bytes)
        grid = (pl.cdiv(rows, tile_r),)

        w = weight.astype(x.dtype)
        b = bias.astype(x.dtype)
        zero = jnp.zeros((), x.dtype)
        own = jnp.stack([w[0, 0], w[1, 1]])   # weight on lane's own value
        nxt = jnp.stack([w[0, 1], zero])      # weight on x[i+1] (live on even lanes)
        prv = jnp.stack([zero, w[1, 0]])      # weight on x[i-1] (live on odd lanes)
        bia = jnp.stack([b[0], b[1]])
        params = jnp.tile(jnp.stack([own, nxt, prv, bia]), (1, lanes // 2))  # (4, L)

        x_dense = x.reshape(rows, lanes)      # free row-major reshape

        y_dense = pl.pallas_call(
            _dense_kernel,
            out_shape=jax.ShapeDtypeStruct((rows, lanes), x.dtype),
            grid_spec=pltpu.PrefetchScalarGridSpec(
                num_scalar_prefetch=0,
                grid=grid,
                in_specs=[
                    pl.BlockSpec((tile_r, lanes), lambda i: (i, 0)),
                    pl.BlockSpec((4, lanes), lambda i: (0, 0)),
                ],
                out_specs=pl.BlockSpec((tile_r, lanes), lambda i: (i, 0)),
            ),
            compiler_params=pltpu.CompilerParams(
                dimension_semantics=("parallel",),
            ),
            cost_estimate=pl.CostEstimate(
                flops=6 * total,
                transcendentals=0,
                bytes_accessed=2 * total * itemsize + 4 * lanes * itemsize,
            ),
        )(x_dense, params)
        return y_dense.reshape(B, out_features)

    # ---------------- generic fallback (lane-sparse) ----------------
    params = jnp.concatenate(
        [weight.T.astype(x.dtype), bias.reshape(1, out_features).astype(x.dtype)],
        axis=0,
    )
    tile_b = 1024
    tb = B if B <= tile_b else tile_b
    grid = (pl.cdiv(B, tb),)

    return pl.pallas_call(
        _generic_kernel,
        out_shape=jax.ShapeDtypeStruct((B, out_features), x.dtype),
        grid_spec=pltpu.PrefetchScalarGridSpec(
            num_scalar_prefetch=0,
            grid=grid,
            in_specs=[
                pl.BlockSpec((tb, in_features), lambda i: (i, 0)),
                pl.BlockSpec((in_features + 1, out_features), lambda i: (0, 0)),
            ],
            out_specs=pl.BlockSpec((tb, out_features), lambda i: (i, 0)),
        ),
        compiler_params=pltpu.CompilerParams(
            dimension_semantics=("parallel",),
        ),
        cost_estimate=pl.CostEstimate(
            flops=2 * B * in_features * out_features,
            transcendentals=0,
            bytes_accessed=B * (in_features + out_features) * itemsize,
        ),
    )(x, params)


def init_params(key, in_features=2, out_features=2, dtype=jnp.float32):
    # Deterministic init mirroring torch.nn.Linear's U(-1/sqrt(in), 1/sqrt(in)).
    kw, kb = jax.random.split(key)
    bound = 1.0 / (in_features ** 0.5)
    weight = jax.random.uniform(kw, (out_features, in_features), dtype,
                                minval=-bound, maxval=bound)
    bias = jax.random.uniform(kb, (out_features,), dtype,
                              minval=-bound, maxval=bound)
    return weight, bias


if __name__ == "__main__":
    key = jax.random.PRNGKey(0)
    k_x, k_p = jax.random.split(key)

    in_features, out_features = 2, 2
    weight, bias = init_params(k_p, in_features=in_features,
                               out_features=out_features)

    # Batch sizes chosen to cover: tiny fallback (8), non-multiple-of-8 fallback (7),
    # lane-dense with rows < 8 (640), lane-dense single step (2048), and lane-dense
    # with a 2-step "parallel" grid (8192).  All shapes stay small.
    for B in (8, 7, 640, 2048, 8192):
        kx = jax.random.fold_in(k_x, B)
        x = jax.random.normal(kx, (B, in_features), dtype=jnp.float32)
        y = embedding_net_forward(x, weight, bias)
        jax.block_until_ready(y)
        y_ref = x @ weight.T + bias
        assert y.shape == (B, out_features)
        assert jnp.allclose(y, y_ref, atol=1e-5, rtol=1e-5), f"mismatch at B={B}"

    print("KERNEL_OK")
</pallas_src>

<mosaic_0001>
module attributes {stable_mosaic.version = 11 : i64} {
  func.func @_generic_kernel(%arg0: i32, %arg1: memref<8x2xf32, #tpu.memory_space<vmem>>, %arg2: memref<3x2xf32, #tpu.memory_space<vmem>>, %arg3: memref<8x2xf32, #tpu.memory_space<vmem>>) attributes {dimension_semantics = [#tpu.dimension_semantics<parallel>], iteration_bounds = array<i64: 1>, scalar_prefetch = 0 : i64, scratch_operands = 0 : i64, tpu.core_type = #tpu.core_type<tc>, window_params = [{transform_indices = @transform_0, window_bounds = array<i64: 8, 2>}, {pipeline_mode = #tpu.pipeline_mode<synchronous>, transform_indices = @transform_1, window_bounds = array<i64: 3, 2>}, {transform_indices = @transform_2, window_bounds = array<i64: 8, 2>}]} {
    %c0 = arith.constant 0 : index
    %c0_0 = arith.constant 0 : index
    %0 = vector.load %arg1[%c0, %c0_0] : memref<8x2xf32, #tpu.memory_space<vmem>>, vector<8x2xf32>
    %c0_1 = arith.constant 0 : index
    %c0_2 = arith.constant 0 : index
    %1 = vector.load %arg2[%c0_1, %c0_2] : memref<3x2xf32, #tpu.memory_space<vmem>>, vector<3x2xf32>
    %2 = vector.extract_strided_slice %0 {offsets = [0, 0], sizes = [8, 1], strides = [1, 1]} : vector<8x2xf32> to vector<8x1xf32>
    %3 = vector.extract_strided_slice %1 {offsets = [0, 0], sizes = [1, 2], strides = [1, 1]} : vector<3x2xf32> to vector<1x2xf32>
    %4 = vector.broadcast %2 : vector<8x1xf32> to vector<8x2xf32>
    %5 = vector.broadcast %3 : vector<1x2xf32> to vector<8x2xf32>
    %6 = arith.mulf %4, %5 : vector<8x2xf32>
    %7 = vector.extract_strided_slice %0 {offsets = [0, 1], sizes = [8, 1], strides = [1, 1]} : vector<8x2xf32> to vector<8x1xf32>
    %8 = vector.extract_strided_slice %1 {offsets = [1, 0], sizes = [1, 2], strides = [1, 1]} : vector<3x2xf32> to vector<1x2xf32>
    %9 = vector.broadcast %7 : vector<8x1xf32> to vector<8x2xf32>
    %10 = vector.broadcast %8 : vector<1x2xf32> to vector<8x2xf32>
    %11 = arith.mulf %9, %10 : vector<8x2xf32>
    %12 = arith.addf %6, %11 : vector<8x2xf32>
    %13 = vector.extract_strided_slice %1 {offsets = [2, 0], sizes = [1, 2], strides = [1, 1]} : vector<3x2xf32> to vector<1x2xf32>
    %14 = vector.broadcast %13 : vector<1x2xf32> to vector<8x2xf32>
    %15 = arith.addf %12, %14 : vector<8x2xf32>
    %c0_3 = arith.constant 0 : index
    %c0_4 = arith.constant 0 : index
    %16 = vector.load %arg3[%c0_3, %c0_4] : memref<8x2xf32, #tpu.memory_space<vmem>>, vector<8x2xf32>
    tpu.vector_store %arg3[%c0_3, %c0_4], %15 {strides = array<i32>} : memref<8x2xf32, #tpu.memory_space<vmem>>, vector<8x2xf32>,
    return
  }
  func.func @transform_0(%arg0: i32) -> (i32, i32) {
    %c0_i32 = arith.constant 0 : i32
    %c0_i32_0 = arith.constant 0 : i32
    return %arg0, %c0_i32 : i32, i32
  }
  func.func @transform_1(%arg0: i32) -> (i32, i32) {
    %c0_i32 = arith.constant 0 : i32
    %c0_i32_0 = arith.constant 0 : i32
    %c0_i32_1 = arith.constant 0 : i32
    return %c0_i32, %c0_i32_0 : i32, i32
  }
  func.func @transform_2(%arg0: i32) -> (i32, i32) {
    %c0_i32 = arith.constant 0 : i32
    %c0_i32_0 = arith.constant 0 : i32
    return %arg0, %c0_i32 : i32, i32
  }
}

</mosaic_0001>

<bundles_post_ra>
// kernel: tpu_custom_call.1
= control target key start
LH: loop header
LB: loop body
LE: loop exit
PB: predicated region body
PF: predicated region fallthrough
CT: control target
= control target key end

     0   :  { %v48_v0 = vmov 0   ;;  %v49_v2 = vmov 1   ;;  %v18_v3 = vlaneseq  ;;  %vm38_vm0 = vcmask 15360   ;;  %s74_s0 = inlined_call_operand.vmem [shape: f32[8,2], index: 0, kind: input, shape index: {}]   ;;  %s75_s1 = inlined_call_operand.vmem [shape: f32[3,2], index: 1, kind: input, shape index: {}]   ;;  %s76_s2 = inlined_call_operand.vmem [shape: f32[8,2], index: 2, kind: output, shape index: {}]  }
   0x1   :  { %46 = vset.pattern.permute.xlu0 %v48_v0  ;;  %v11_v1 = vld [vmem:[%s74_s0] sm:$0xff] }
   0x2   :  { %15 = vperm.xlu0 %46, %v11_v1   ;;  %v19_v4 = vshrl.u32 %v18_v3, 7  ;;  %v12_v7 = vld [vmem:[%s75_s1] sm:$0x7] }
   0x4   :  { %v20_v5 = vsub.s32 0, %v19_v4  ;;  %v29_v6 = vsub.s32 1, %v19_v4  ;;  %v35_v11 = vsub.s32 2, %v19_v4 }
   0x6   :  { %47 = vset.pattern.permute.xlu0 %v49_v2  ;;  %v21_v9 = vrot.slane %v12_v7, %v20_v5  ;;  %v30_v10 = vrot.slane %v12_v7, %v29_v6  ;;  %v36_v14 = vrot.slane %v12_v7, %v35_v11 }
   0x7   :  { %24 = vperm.xlu0 %47, %v11_v1  }
  0x81   :  { %v16_v8 = vpop.permute.xlu0 %15 }
  0x82   :  { %v22_v13 = vmul.f32 %v21_v9, %v16_v8 }
  0x86   :  { %v25_v12 = vpop.permute.xlu0 %24 }
  0x87   :  { %v31_v15 = vmul.f32 %v30_v10, %v25_v12 }
  0x89   :  { %v32_v16 = vadd.f32 %v31_v15, %v22_v13 }
  0x8b   :  { %v37_v17 = vadd.f32 %v36_v14, %v32_v16 }
  0x8d   :  { %39 = vst.msk [vmem:[%s76_s2] sm:$0xff] %vm38_vm0, %v37_v17 }

</bundles_post_ra>
